<compile_context>
chip_gen: v7x
topology: tpu7x:2x2x1
jax: 0.10.0
libtpu: 0.0.40
codegen_flags: <defaults>
</compile_context>

<pallas_src>
import functools

import jax
import jax.numpy as jnp
from jax.experimental import pallas as pl
from jax.experimental.pallas import tpu as pltpu


def _pow(x, p):
    """Exponent-specialized power (avoids generic log+exp pow on the EUP)."""
    if p == 1.0:
        return x
    if p == 0.5:
        return jnp.sqrt(x)
    if p == -0.5:
        return jax.lax.rsqrt(x)
    if p == 2.0:
        return x * x
    return x ** p


def _round_up(v, m):
    return -(-v // m) * m


def saff_kernel(x_ref, o_ref, zacc, nxacc, cntacc, *,
                a, b, sigma, K, hw_total, needs_mask):
    """Grid = (batch blocks [parallel], HW tiles [arbitrary, reduction]).

    x_ref : (Bn, K, THW)  input tile (channels on sublanes, spatial on lanes)
    o_ref : (Bn, K, 1)    per-channel output, written on the last HW tile only
    zacc  : (Bn, 1, 1)    f32 accumulator of sum_hw S**a
    nxacc : (Bn, K, 1)    f32 accumulator of sum_hw x * S**(1/b)
    cntacc: (Bn, K, 1)    f32 accumulator of sum_hw (x > 0)
    """
    j = pl.program_id(1)

    @pl.when(j == 0)
    def _init():
        zacc[...] = jnp.zeros_like(zacc)
        nxacc[...] = jnp.zeros_like(nxacc)
        cntacc[...] = jnp.zeros_like(cntacc)

    # Upcast in-register; the HBM/VMEM tile may be bf16 (half the bytes).
    x = x_ref[...].astype(jnp.float32)                       # (Bn, K, THW)

    if needs_mask:
        # Tail HW tile extends past h*w: zero the out-of-range lanes so they
        # contribute nothing (0**a == 0 for a > 0, 0 > 0 is False).
        thw = x_ref.shape[2]
        lane = jax.lax.broadcasted_iota(jnp.int32, x.shape, 2)
        valid = hw_total - j * thw
        x = jnp.where(lane < valid, x, 0.0)

    # NOTE: S**a NaNs for negative channel-sums and z==0 gives inf/NaN — this
    # matches the PyTorch reference behavior exactly.
    S = jnp.sum(x, axis=1, keepdims=True)                    # (Bn, 1, THW)
    Sa = _pow(S, a)                                          # S**a
    Sb = Sa if a == 1.0 / b else _pow(S, 1.0 / b)            # S**(1/b)

    zacc[...] += jnp.sum(Sa, axis=2, keepdims=True)                       # (Bn,1,1)
    nxacc[...] += jnp.sum(x * Sb, axis=2, keepdims=True)                  # (Bn,K,1)
    cntacc[...] += jnp.sum((x > 0.0).astype(jnp.float32), axis=2,
                           keepdims=True)                                 # (Bn,K,1)

    @pl.when(j == pl.num_programs(1) - 1)
    def _finalize():
        # z = (sum_hw S**a)**(1/a)  =>  z**(1/b) = zacc**(1/(a*b))
        zb = _pow(zacc[...], 1.0 / (a * b))                  # (Bn,1,1)
        new_x = nxacc[...] / zb                              # (Bn,K,1)
        # Divisor 256**2 is hard-coded in the reference module, independent of
        # the actual spatial size — kept for exact parity.
        omg = cntacc[...] * (1.0 / (256.0 ** 2))             # (Bn,K,1)
        omg_sum = jnp.sum(omg, axis=1, keepdims=True)        # (Bn,1,1)
        omg = jnp.log((K * sigma + omg_sum) / (sigma + omg))
        o_ref[...] = (omg * new_x).astype(o_ref.dtype)


def _vmem_budget():
    """Generation-aware (block_cap_bytes, vmem_limit_bytes)."""
    try:
        cap = int(pltpu.get_tpu_info().vmem_capacity_bytes)
    except Exception:
        cap = 64 * 1024 * 1024  # conservative fallback (v7x per-TC VMEM)
    if cap <= 64 * 1024 * 1024:
        # v7x-class: 64 MiB per TC -> 2x14 MiB blocks + scratch under 48 MiB.
        return 14 * 1024 * 1024, 48 * 1024 * 1024
    # v5e / v6e: 128 MiB physical VMEM -> push blocks much larger.
    return 24 * 1024 * 1024, 80 * 1024 * 1024


def _choose_tiles(n, K, HW, dtype, block_cap):
    """Pick (batch_block bn, hw_tile thw).

    Accounts for sublane padding of K (8 f32 / 16 bf16) and 128-lane padding
    of the spatial tile, and keeps the batch grid axis >= 2 whenever n >= 2 so
    the 'parallel' axis shards across both TensorCores on v7x.
    """
    itemsize = jnp.dtype(dtype).itemsize
    sublane = (8 * 4) // itemsize            # 8 (f32) / 16 (bf16) / 32 (int8)
    K_pad = _round_up(K, sublane)
    bn_cap = n // 2 if n >= 2 else 1         # >=2 parallel batch steps (v7x 2 TCs)

    full_img_bytes = K_pad * _round_up(HW, 128) * itemsize
    if full_img_bytes <= block_cap or HW < 128:
        # Whole image per block (single HW step); pack batches up to the cap.
        thw = HW
        bn = 1
        start = max(1, min(bn_cap, block_cap // max(1, full_img_bytes)))
        for d in range(start, 0, -1):
            if n % d == 0:
                bn = d
                break
        return bn, thw
    # Large image: one batch element per block, biggest 128-multiple HW tile
    # that fits the budget.  Non-dividing tiles are handled with tail masking.
    thw_fit = (block_cap // (K_pad * itemsize)) // 128 * 128
    thw = max(128, min(thw_fit, (HW // 128) * 128))
    return 1, thw


def saff(x, a=0.5, b=2.0, sigma=1e-4, *, hw_tile=None, batch_block=None):
    """x: (n, K, h, w) float32 or bfloat16 (NCHW). Returns (n, K) float32."""
    n, K, h, w = x.shape
    HW = h * w
    # Free reshape of contiguous NCHW memory — no transpose, no extra HBM pass.
    xr = x.reshape(n, K, HW)

    block_cap, vmem_limit = _vmem_budget()
    bn, thw = _choose_tiles(n, K, HW, x.dtype, block_cap)
    if hw_tile is not None:
        thw = hw_tile
    if batch_block is not None:
        bn = batch_block
    assert n % bn == 0, (n, bn)
    assert thw == HW or thw % 128 == 0, (HW, thw)

    grid_hw = pl.cdiv(HW, thw)
    needs_mask = (HW % thw) != 0            # tail HW tile extends past h*w
    # Tail masking zeroes padded lanes; contributions vanish only for a > 0
    # (default a=0.5).  For a <= 0 pick a dividing hw_tile.
    grid = (n // bn, grid_hw)
    # For n == 1 the parallel axis has a single step, so only one TensorCore
    # is used on v7x (splitting HW across a parallel axis is not done here).

    # Make sure the limit covers the padded, double-buffered input blocks.
    itemsize = jnp.dtype(x.dtype).itemsize
    sublane = (8 * 4) // itemsize
    blk_bytes = bn * _round_up(K, sublane) * _round_up(thw, 128) * itemsize
    vmem_limit = max(vmem_limit, 2 * blk_bytes + (4 << 20))

    out = pl.pallas_call(
        functools.partial(saff_kernel, a=a, b=b, sigma=sigma, K=K,
                          hw_total=HW, needs_mask=needs_mask),
        out_shape=jax.ShapeDtypeStruct((n, K, 1), jnp.float32),
        grid_spec=pltpu.PrefetchScalarGridSpec(
            num_scalar_prefetch=0,
            grid=grid,
            in_specs=[pl.BlockSpec((bn, K, thw), lambda i, j: (i, 0, j))],
            out_specs=pl.BlockSpec((bn, K, 1), lambda i, j: (i, 0, 0)),
            scratch_shapes=[
                pltpu.VMEM((bn, 1, 1), jnp.float32),   # sum_hw S**a
                pltpu.VMEM((bn, K, 1), jnp.float32),   # sum_hw x * S**(1/b)
                pltpu.VMEM((bn, K, 1), jnp.float32),   # sum_hw (x > 0)
            ],
        ),
        compiler_params=pltpu.CompilerParams(
            # Batch axis parallel (megacore on v7x); HW reduction axis last.
            dimension_semantics=("parallel", "arbitrary"),
            vmem_limit_bytes=int(vmem_limit),
        ),
    )(xr)
    return out.reshape(n, K)


def saff_ref(x, a=0.5, b=2.0, sigma=1e-4):
    """Pure-JAX reference mirroring the PyTorch forward exactly."""
    n, K, h, w = x.shape
    S = x.sum(axis=1)                                     # (n, h, w)
    z = jnp.sum(S ** a, axis=(1, 2))                      # (n,)
    z = (z ** (1.0 / a)).reshape(n, 1, 1)
    S = (S / z) ** (1.0 / b)
    S = S[:, None, :, :]                                  # (n, 1, h, w)
    new_x = (x * S).sum(axis=(2, 3))                      # (n, K)
    omg = (x > 0).astype(jnp.float32).sum(axis=(2, 3)) / (256.0 ** 2)
    omg_sum = omg.sum(axis=1, keepdims=True)
    omg = (K * sigma + omg_sum) / (sigma + omg)
    omg = jnp.log(omg)
    return omg * new_x


if __name__ == "__main__":
    key = jax.random.PRNGKey(0)
    k0, k1 = jax.random.split(key)

    # Positive inputs keep S**0.5 finite (the reference would NaN on negative S too).
    x = jax.random.uniform(k0, (2, 4, 16, 16), dtype=jnp.float32)
    ref = saff_ref(x)

    out = jax.block_until_ready(saff(x))
    assert out.shape == (2, 4)
    assert jnp.allclose(out, ref, rtol=2e-5, atol=1e-5), (out, ref)

    # Multi-tile HW reduction path (grid = (2, 2), tiles divide evenly).
    out_tiled = jax.block_until_ready(saff(x, hw_tile=128, batch_block=1))
    assert jnp.allclose(out_tiled, ref, rtol=2e-5, atol=1e-5), (out_tiled, ref)

    # Non-multiple-of-128 spatial size: default full-dim block, and the
    # masked-tail tiled path (hw_tile=128 does not divide 15*15=225).
    x_odd = jax.random.uniform(k1, (2, 4, 15, 15), dtype=jnp.float32)
    ref_odd = saff_ref(x_odd)
    out_odd = jax.block_until_ready(saff(x_odd))
    assert jnp.allclose(out_odd, ref_odd, rtol=2e-5, atol=1e-5), (out_odd, ref_odd)
    out_odd_masked = jax.block_until_ready(saff(x_odd, hw_tile=128, batch_block=1))
    assert jnp.allclose(out_odd_masked, ref_odd, rtol=2e-5, atol=1e-5), (
        out_odd_masked, ref_odd)

    # bf16 input path (halves HBM traffic; f32 accumulation inside the kernel).
    x_bf16 = x.astype(jnp.bfloat16)
    out_bf16 = jax.block_until_ready(saff(x_bf16))
    ref_bf16 = saff_ref(x_bf16.astype(jnp.float32))
    assert jnp.allclose(out_bf16, ref_bf16, rtol=1e-3, atol=1e-3), (out_bf16, ref_bf16)

    print("KERNEL_OK")
</pallas_src>

<mosaic_0001>
module attributes {stable_mosaic.version = 11 : i64} {
  func.func @saff_kernel(%arg0: i32, %arg1: i32, %arg2: memref<1x4x256xf32, #tpu.memory_space<vmem>>, %arg3: memref<1x4x1xf32, #tpu.memory_space<vmem>>, %arg4: memref<1x1x1xf32, #tpu.memory_space<vmem>>, %arg5: memref<1x4x1xf32, #tpu.memory_space<vmem>>, %arg6: memref<1x4x1xf32, #tpu.memory_space<vmem>>) attributes {dimension_semantics = [#tpu.dimension_semantics<parallel>, #tpu.dimension_semantics<arbitrary>], iteration_bounds = array<i64: 2, 1>, scalar_prefetch = 0 : i64, scratch_operands = 3 : i64, tpu.core_type = #tpu.core_type<tc>, window_params = [{transform_indices = @transform_0, window_bounds = array<i64: 1, 4, 256>}, {transform_indices = @transform_1, window_bounds = array<i64: 1, 4, 1>}]} {
    %c0_i32 = arith.constant 0 : i32
    %0 = arith.cmpi eq, %arg1, %c0_i32 : i32
    %1 = arith.extui %0 : i1 to i32
    %c0_i32_0 = arith.constant 0 : i32
    %2 = arith.cmpi ne, %1, %c0_i32_0 : i32
    scf.if %2 {
      %cst_27 = arith.constant 0.000000e+00 : f32
      %31 = vector.broadcast %cst_27 : f32 to vector<1x1x1xf32>
      %c0_28 = arith.constant 0 : index
      %c0_29 = arith.constant 0 : index
      %c0_30 = arith.constant 0 : index
      %32 = vector.load %arg4[%c0_28, %c0_29, %c0_30] : memref<1x1x1xf32, #tpu.memory_space<vmem>>, vector<1x1x1xf32>
      tpu.vector_store %arg4[%c0_28, %c0_29, %c0_30], %31 {strides = array<i32>} : memref<1x1x1xf32, #tpu.memory_space<vmem>>, vector<1x1x1xf32>,
      %cst_31 = arith.constant 0.000000e+00 : f32
      %33 = vector.broadcast %cst_31 : f32 to vector<1x4x1xf32>
      %c0_32 = arith.constant 0 : index
      %c0_33 = arith.constant 0 : index
      %c0_34 = arith.constant 0 : index
      %34 = vector.load %arg5[%c0_32, %c0_33, %c0_34] : memref<1x4x1xf32, #tpu.memory_space<vmem>>, vector<1x4x1xf32>
      tpu.vector_store %arg5[%c0_32, %c0_33, %c0_34], %33 {strides = array<i32>} : memref<1x4x1xf32, #tpu.memory_space<vmem>>, vector<1x4x1xf32>,
      %cst_35 = arith.constant 0.000000e+00 : f32
      %35 = vector.broadcast %cst_35 : f32 to vector<1x4x1xf32>
      %c0_36 = arith.constant 0 : index
      %c0_37 = arith.constant 0 : index
      %c0_38 = arith.constant 0 : index
      %36 = vector.load %arg6[%c0_36, %c0_37, %c0_38] : memref<1x4x1xf32, #tpu.memory_space<vmem>>, vector<1x4x1xf32>
      tpu.vector_store %arg6[%c0_36, %c0_37, %c0_38], %35 {strides = array<i32>} : memref<1x4x1xf32, #tpu.memory_space<vmem>>, vector<1x4x1xf32>,
    } else {
    }
    %c0 = arith.constant 0 : index
    %c0_1 = arith.constant 0 : index
    %c0_2 = arith.constant 0 : index
    %3 = vector.load %arg2[%c0, %c0_1, %c0_2] : memref<1x4x256xf32, #tpu.memory_space<vmem>>, vector<1x4x256xf32>
    %cst = arith.constant dense<0.000000e+00> : vector<1x256xf32>
    %4 = vector.multi_reduction <add>, %3, %cst [1] : vector<1x4x256xf32> to vector<1x256xf32>
    %5 = vector.shape_cast %4 : vector<1x256xf32> to vector<1x1x256xf32>
    %6 = math.sqrt %5 : vector<1x1x256xf32>
    %c0_3 = arith.constant 0 : index
    %c0_4 = arith.constant 0 : index
    %c0_5 = arith.constant 0 : index
    %7 = vector.load %arg4[%c0_3, %c0_4, %c0_5] : memref<1x1x1xf32, #tpu.memory_space<vmem>>, vector<1x1x1xf32>
    %cst_6 = arith.constant dense<0.000000e+00> : vector<1x1xf32>
    %8 = vector.multi_reduction <add>, %6, %cst_6 [2] : vector<1x1x256xf32> to vector<1x1xf32>
    %9 = vector.shape_cast %8 : vector<1x1xf32> to vector<1x1x1xf32>
    %10 = arith.addf %7, %9 : vector<1x1x1xf32>
    %c0_7 = arith.constant 0 : index
    %c0_8 = arith.constant 0 : index
    %c0_9 = arith.constant 0 : index
    %11 = vector.load %arg4[%c0_7, %c0_8, %c0_9] : memref<1x1x1xf32, #tpu.memory_space<vmem>>, vector<1x1x1xf32>
    tpu.vector_store %arg4[%c0_7, %c0_8, %c0_9], %10 {strides = array<i32>} : memref<1x1x1xf32, #tpu.memory_space<vmem>>, vector<1x1x1xf32>,
    %c0_10 = arith.constant 0 : index
    %c0_11 = arith.constant 0 : index
    %c0_12 = arith.constant 0 : index
    %12 = vector.load %arg5[%c0_10, %c0_11, %c0_12] : memref<1x4x1xf32, #tpu.memory_space<vmem>>, vector<1x4x1xf32>
    %13 = vector.broadcast %6 : vector<1x1x256xf32> to vector<1x4x256xf32>
    %14 = arith.mulf %3, %13 : vector<1x4x256xf32>
    %cst_13 = arith.constant dense<0.000000e+00> : vector<1x4xf32>
    %15 = vector.multi_reduction <add>, %14, %cst_13 [2] : vector<1x4x256xf32> to vector<1x4xf32>
    %16 = vector.shape_cast %15 : vector<1x4xf32> to vector<1x4x1xf32>
    %17 = arith.addf %12, %16 : vector<1x4x1xf32>
    %c0_14 = arith.constant 0 : index
    %c0_15 = arith.constant 0 : index
    %c0_16 = arith.constant 0 : index
    %18 = vector.load %arg5[%c0_14, %c0_15, %c0_16] : memref<1x4x1xf32, #tpu.memory_space<vmem>>, vector<1x4x1xf32>
    tpu.vector_store %arg5[%c0_14, %c0_15, %c0_16], %17 {strides = array<i32>} : memref<1x4x1xf32, #tpu.memory_space<vmem>>, vector<1x4x1xf32>,
    %c0_17 = arith.constant 0 : index
    %c0_18 = arith.constant 0 : index
    %c0_19 = arith.constant 0 : index
    %19 = vector.load %arg6[%c0_17, %c0_18, %c0_19] : memref<1x4x1xf32, #tpu.memory_space<vmem>>, vector<1x4x1xf32>
    %cst_20 = arith.constant 0.000000e+00 : f32
    %20 = vector.broadcast %cst_20 : f32 to vector<1x4x256xf32>
    %21 = arith.cmpf ogt, %3, %20 : vector<1x4x256xf32>
    %22 = arith.extui %21 : vector<1x4x256xi1> to vector<1x4x256xi32>
    %23 = arith.sitofp %22 : vector<1x4x256xi32> to vector<1x4x256xf32>
    %cst_21 = arith.constant dense<0.000000e+00> : vector<1x4xf32>
    %24 = vector.multi_reduction <add>, %23, %cst_21 [2] : vector<1x4x256xf32> to vector<1x4xf32>
    %25 = vector.shape_cast %24 : vector<1x4xf32> to vector<1x4x1xf32>
    %26 = arith.addf %19, %25 : vector<1x4x1xf32>
    %c0_22 = arith.constant 0 : index
    %c0_23 = arith.constant 0 : index
    %c0_24 = arith.constant 0 : index
    %27 = vector.load %arg6[%c0_22, %c0_23, %c0_24] : memref<1x4x1xf32, #tpu.memory_space<vmem>>, vector<1x4x1xf32>
    tpu.vector_store %arg6[%c0_22, %c0_23, %c0_24], %26 {strides = array<i32>} : memref<1x4x1xf32, #tpu.memory_space<vmem>>, vector<1x4x1xf32>,
    %c0_i32_25 = arith.constant 0 : i32
    %28 = arith.cmpi eq, %arg1, %c0_i32_25 : i32
    %29 = arith.extui %28 : i1 to i32
    %c0_i32_26 = arith.constant 0 : i32
    %30 = arith.cmpi ne, %29, %c0_i32_26 : i32
    scf.if %30 {
      %c0_27 = arith.constant 0 : index
      %c0_28 = arith.constant 0 : index
      %c0_29 = arith.constant 0 : index
      %31 = vector.load %arg4[%c0_27, %c0_28, %c0_29] : memref<1x1x1xf32, #tpu.memory_space<vmem>>, vector<1x1x1xf32>
      %c0_30 = arith.constant 0 : index
      %c0_31 = arith.constant 0 : index
      %c0_32 = arith.constant 0 : index
      %32 = vector.load %arg5[%c0_30, %c0_31, %c0_32] : memref<1x4x1xf32, #tpu.memory_space<vmem>>, vector<1x4x1xf32>
      %33 = vector.broadcast %31 : vector<1x1x1xf32> to vector<1x4x1xf32>
      %34 = arith.divf %32, %33 : vector<1x4x1xf32>
      %c0_33 = arith.constant 0 : index
      %c0_34 = arith.constant 0 : index
      %c0_35 = arith.constant 0 : index
      %35 = vector.load %arg6[%c0_33, %c0_34, %c0_35] : memref<1x4x1xf32, #tpu.memory_space<vmem>>, vector<1x4x1xf32>
      %cst_36 = arith.constant 1.52587891E-5 : f32
      %36 = vector.broadcast %cst_36 : f32 to vector<1x4x1xf32>
      %37 = arith.mulf %35, %36 : vector<1x4x1xf32>
      %cst_37 = arith.constant dense<0.000000e+00> : vector<1x1xf32>
      %38 = vector.multi_reduction <add>, %37, %cst_37 [1] : vector<1x4x1xf32> to vector<1x1xf32>
      %39 = vector.shape_cast %38 : vector<1x1xf32> to vector<1x1x1xf32>
      %cst_38 = arith.constant 4.000000e-04 : f32
      %40 = vector.broadcast %cst_38 : f32 to vector<1x1x1xf32>
      %41 = arith.addf %40, %39 : vector<1x1x1xf32>
      %cst_39 = arith.constant 9.99999974E-5 : f32
      %42 = vector.broadcast %cst_39 : f32 to vector<1x4x1xf32>
      %43 = arith.addf %42, %37 : vector<1x4x1xf32>
      %44 = vector.broadcast %41 : vector<1x1x1xf32> to vector<1x4x1xf32>
      %45 = arith.divf %44, %43 : vector<1x4x1xf32>
      %46 = math.log %45 : vector<1x4x1xf32>
      %47 = arith.mulf %46, %34 : vector<1x4x1xf32>
      %c0_40 = arith.constant 0 : index
      %c0_41 = arith.constant 0 : index
      %c0_42 = arith.constant 0 : index
      %48 = vector.load %arg3[%c0_40, %c0_41, %c0_42] : memref<1x4x1xf32, #tpu.memory_space<vmem>>, vector<1x4x1xf32>
      tpu.vector_store %arg3[%c0_40, %c0_41, %c0_42], %47 {strides = array<i32>} : memref<1x4x1xf32, #tpu.memory_space<vmem>>, vector<1x4x1xf32>,
    } else {
    }
    return
  }
  func.func @transform_0(%arg0: i32, %arg1: i32) -> (i32, i32, i32) {
    %c0_i32 = arith.constant 0 : i32
    %c0_i32_0 = arith.constant 0 : i32
    return %arg0, %c0_i32, %arg1 : i32, i32, i32
  }
  func.func @transform_1(%arg0: i32, %arg1: i32) -> (i32, i32, i32) {
    %c0_i32 = arith.constant 0 : i32
    %c0_i32_0 = arith.constant 0 : i32
    %c0_i32_1 = arith.constant 0 : i32
    return %arg0, %c0_i32, %c0_i32_0 : i32, i32, i32
  }
}

</mosaic_0001>

<bundles_post_ra>
// kernel: tpu_custom_call.1
= control target key start
LH: loop header
LB: loop body
LE: loop exit
PB: predicated region body
PF: predicated region fallthrough
CT: control target
= control target key end

     0   :  { %6 = vsyncpa [#allocation6], 0  ;;  %s650_s0 = inlined_call_operand.hbm [shape: f32[2,4,256], index: 0, kind: input, shape index: {}]   ;;  %s651_s1 = inlined_call_operand.vmem [shape: f32[2,4,1], index: 1, kind: output, shape index: {}]  }
   0x1   :  { %8 = vsyncpa [#allocation6 + $0x1], 0  ;;  %s511_s6 = smov 0   ;;  %s513_s7 = smov 0  }
   0x2   :  { %s515_s8 = smov 0   ;;  %s517_s9 = smov 0  }
   0x3   :  { %s519_s10 = smov 0   ;;  %s521_s11 = smov 0  }
   0x4 LB: > { %s336_s12 = sadd.s32 4294967295, %s497_s11   ;;  %s26_s13 = sadd.s32 1, %s493_s10  ;;  %s497_s11 = sphi %s521_s11, %s14_s11   ;;  %s493_s10 = sphi %s519_s10, %s661_s10   ;;  %s489_s9 = sphi %s517_s9, %s660_s9   ;;  %s485_s8 = sphi %s515_s8, %s659_s8   ;;  %s481_s7 = sphi %s513_s7, %s658_s7   ;;  %s477_s6 = sphi %s511_s6, %s657_s6  }
   0x5   : > { %p28_p0 = scmp.ge.s32.totalorder %s26_s13, 2  ;;  %s35_s14 = sadd.s32 1, %s485_s8 }
   0x6   : > { %p42_p1 = scmp.ne.s32.totalorder %s485_s8, %s481_s7  ;;  %p43_p2 = scmp.eq.s32.totalorder %s497_s11, 0 }
   0x7   : > { %s663_s13 = smov (%p28_p0, %s26_s13), 0  ;;  %p48_p4 = scmp.ne.s32.totalorder %s481_s7, %s477_s6 }
   0x8   : > { %p547_p3 = por %p43_p2, %p42_p1  ;;  %s30_s16 = ssub.s32 %s493_s10, %s663_s13 }
   0x9   : > { %p49_p5 = scmp.eq.s32.totalorder %s336_s12, 0  ;;  %p33_p6 = scmp.eq.s32.totalorder %s30_s16, 0 }
   0xa   : > { %p357_p8 = scmp.lt.s32.totalorder %s497_s11, 2  ;;  %s98_s19 = sand.u32 1, %s485_s8  }
   0xb   : > { %p554_p7 = por %p49_p5, %p48_p4  ;;  %s350_s20 = sshll.u32 %s493_s10, 7 }
   0xc   : > { %s560_s18 = scalar_select %p33_p6, %s485_s8, %s35_s14  }
   0xd   : > { %s340_s21 = sshll.u32 %s98_s19, 3  ;;  %s567_s24 = scalar_lea.hbm %s650_s0, %s350_s20 }
   0xe   : > { %s102_s25 = scalar_lea.vmem [#allocation5], %s340_s21  ;;  %p571_p9 = pnand %p357_p8, %p547_p3 }
   0xf   : > { %s112_s26 = sshll.u32 %s102_s25, 4  ;;  %s99_s28 = scalar_lea.sflag [#allocation6], %s98_s19  ;;  %s575_s26 = int_to_ptr.vmem [resolvable:$true] %s112_s26 }
  0x10   : > { %s417_s29 = scalar_lea.hbm %s567_s24, 128  ;;  %p419_p13 = pneg %p571_p9 }
  0x11   : > { %p418_p12 = scmp.ne.s32.totalorder %s567_s24, %s417_s29  ;;  %s422_s3 = scalar_lea.hbm %s650_s0, 256 }
  0x12   : > { %p423_p2 = scmp.lt.u32.totalorder %s567_s24, %s650_s0  ;;  %p424_p3 = scmp.lt.u32.totalorder %s422_s3, %s417_s29 }
  0x13   : > { %p420_p0 = pnand %p419_p13, %p418_p12  ;;  %p426_p5 = scmp.lt.u32.totalorder %s417_s29, %s567_s24 }
  0x14   : > { %p425_p4 = por %p424_p3, %p423_p2 }
  0x15   : > { %p421_p1 = pneg %p420_p0 }
  0x16   : > { %p427_p6 = por %p426_p5, %p425_p4 }
  0x18   : > { %p428_p8 = pnand %p427_p6, %p421_p1 }
  0x1a   : > { %431 = shalt.err (!%p428_p8)
}
  0x1b   : > { %s432_s6 = scalar_lea.vmem %s575_s26, 128  ;;  %s499_s12 = smov [#allocation5]  }
  0x1c   : > { %p433_p12 = scmp.ne.s32.totalorder %s575_s26, %s432_s6  ;;  %s437_s14 = sshll.u32 %s499_s12, 4  ;;  %s438_s14 = int_to_ptr.vmem [resolvable:$false] %s437_s14 }
  0x1d   : > { %s439_s15 = scalar_lea.vmem %s438_s14, 256  ;;  %p440_p11 = scmp.lt.s32.totalorder %s575_s26, %s438_s14 }
  0x1e   : > { %p435_p0 = pnand %p433_p12, %p419_p13  ;;  %p441_p2 = scmp.lt.s32.totalorder %s439_s15, %s432_s6 }
  0x20   : > { %p436_p10 = pneg %p435_p0  ;;  %p442_p3 = por %p441_p2, %p440_p11 }
  0x22   : > { %p443_p4 = pnand %p442_p3, %p436_p10 }
  0x24   : > { %446 = shalt.err (!%p443_p4)
}
  0x25   : > { %356 = dma.hbm_to_vmem [thread:$0]  (!%p571_p9), %s567_s24, 128, %s575_s26, %s99_s28  }
  0x26   : > { %p655_p1 = scmp.lt.s32.totalorder %s497_s11, 3  ;;  %p656_p5 = scmp.ge.s32.totalorder %s497_s11, 1 }
  0x28   : > { %p118_p13 = pnand %p656_p5, %p655_p1 }
  0x29   : > { %s123_s16 = sand.u32 (!%p118_p13), 1, %s481_s7  }
  0x2a   : > { %121 = sbr.rel (%p118_p13) target bundleno = 251 (0xfb), region = 24  ;;  %s344_s19 = sshll.u32 (!%p118_p13), %s123_s16, 3 }
  0x2b   : > { %s124_s20 = scalar_lea.sflag (!%p118_p13), [#allocation6], %s123_s16  ;;  %s127_s21 = scalar_lea.vmem (!%p118_p13), [#allocation5], %s344_s19 }
  0x31   : > { %472 = dma.done.wait (%p554_p7), %s124_s20, 128  }
  0x32   : > { %474 = vsyncadd (%p554_p7), %s124_s20, 4294967168  ;;  %vm154_vm0 = vcmask 0   ;;  %vm156_vm1 = vcmask 3072   ;;  %v500_v0 = vmov 0.0   ;;  %vm163_vm2 = vcmask 1043456   ;;  %v159_v1 = vld [vmem:[%s127_s21] sm:$0xff] }
  0x33   : > { %155 = vst.msk [vmem:[#allocation2] sm:$0x1] %vm154_vm0, %v500_v0  ;;  %vm217_vm3 = vcmp.gt.f32.partialorder %v159_v1, 0.0  ;;  %v161_v2 = vcombine.high %v159_v1, %v159_v1  ;;  %v164_v3 = vsel %vm163_vm2, %v159_v1, 0.0  ;;  %p146_p7 = scmp.lt.s32.totalorder %s489_s9, 1 }
  0x34   : > { %157 = vst.msk [vmem:[#allocation3] sm:$0xf] %vm156_vm1, %v500_v0  ;;  %158 = vst.msk [vmem:[#allocation4] sm:$0xf] %vm156_vm1, %v500_v0  ;;  %v346_v4 = vsel %vm217_vm3, 1.0, %v500_v0  ;;  %v165_v5 = vrot.slane %v164_v3, 4 }
  0x35   : > { %v221_v6 = vcombine.high %v346_v4, %v346_v4  ;;  %v223_v7 = vsel %vm163_vm2, %v346_v4, 0.0  ;;  %v171_v8 = vsel %vm163_vm2, %v161_v2, 0.0  ;;  %s665_s9 = smov (!%p146_p7, %s489_s9), 1 }
  0x36   : > { %v166_v9 = vadd.f32 %v165_v5, %v164_v3  ;;  %v172_v10 = vrot.slane %v171_v8, 4  ;;  %s345_s17 = sshll.u32 %s665_s9, 2 }
  0x37   : > { %v224_v11 = vsel %vm163_vm2, %v221_v6, 0.0  ;;  %s149_s24 = scalar_lea.vmem %s651_s1, %s345_s17 }
  0x38   : > { %v225_v12 = vadd.f32 %v224_v11, %v223_v7  ;;  %v167_v13 = vrot.slane %v166_v9, 2  ;;  %v173_v14 = vadd.f32 %v172_v10, %v171_v8 }
  0x3a   : > { %226 = vadd.xlane.f32.xlu0 %v225_v12  ;;  %v168_v15 = vadd.f32 %v167_v13, %v166_v9  ;;  %v174_v16 = vrot.slane %v173_v14, 2  ;;  %v192_v51 = vld [vmem:[#allocation2] sm:$0x1] }
  0x3b   : > { %v216_v39 = vld [vmem:[#allocation4] sm:$0xf]  ;;  %v199_v57 = vld [vmem:[#allocation3] sm:$0xf] }
  0x3c   : > { %v169_v17 = vrot.slane %v168_v15, 1  ;;  %v175_v18 = vadd.f32 %v174_v16, %v173_v14 }
  0x3e   : > { %v170_v19 = vadd.f32 %v169_v17, %v168_v15  ;;  %v176_v20 = vrot.slane %v175_v18, 1 }
  0x40   : > { %v177_v21 = vadd.f32 %v176_v20, %v175_v18  ;;  %407 = vrsqrt.f32 %v170_v19  ;;  %vm180_vm4 = vcmp.eq.f32.partialorder %v170_v19, inf  ;;  %v183_v23 = vand.u32 2147483648, %v170_v19 }
  0x41   : > { %vm182_vm5 = vcmp.eq.f32.partialorder %v170_v19, 0.0 }
  0x42   : > { %409 = vrsqrt.f32 %v177_v21  ;;  %vm187_vm6 = vcmp.eq.f32.partialorder %v177_v21, inf  ;;  %v190_v26 = vand.u32 2147483648, %v177_v21  ;;  %vm189_vm7 = vcmp.eq.f32.partialorder %v177_v21, 0.0 }
  0x4a   : > { %v408_v22 = vpop.eup %407 }
  0x4b   : > { %v179_v24 = vmul.f32 %v408_v22, %v170_v19 }
  0x4c   : > { %v410_v25 = vpop.eup %409 }
  0x4d   : > { %v181_v27 = vsel %vm180_vm4, %v170_v19, %v179_v24  ;;  %v186_v28 = vmul.f32 %v410_v25, %v177_v21 }
  0x4e   : > { %v184_v29 = vsel %vm182_vm5, %v183_v23, %v181_v27 }
  0x4f   : > { %v188_v30 = vsel %vm187_vm6, %v177_v21, %v186_v28 }
  0x50   : > { %v191_v31 = vsel %vm189_vm7, %v190_v26, %v188_v30 }
  0x51   : > { %v193_v32 = vadd.f32 %v191_v31, %v184_v29  ;;  %v202_v33 = vcombine.low %v184_v29, %v191_v31 }
  0x53   : > { %194 = vadd.xlane.f32.xlu0 %v193_v32  ;;  %v204_v34 = vmul.f32 %v202_v33, %v159_v1 }
  0x55   : > { %v206_v35 = vcombine.high %v204_v34, %v204_v34  ;;  %v208_v36 = vsel %vm163_vm2, %v204_v34, 0.0 }
  0x57   : > { %v209_v37 = vsel %vm163_vm2, %v206_v35, 0.0 }
  0x58   : > { %v210_v38 = vadd.f32 %v209_v37, %v208_v36 }
  0x5a   : > { %211 = vadd.xlane.f32.xlu1 %v210_v38 }
  0xc7   : > { %v227_v40 = vpop.xlane.xlu0 %226 }
  0xc8   : > { %v228_v41 = vadd.f32 %v227_v40, %v216_v39 }
  0xca   : > { %229 = vst.msk [vmem:[#allocation4] sm:$0xf] %vm156_vm1, %v228_v41 }
  0xd1   : > { %v243_v42 = vld [vmem:[#allocation4] sm:$0xf] }
  0xd2   : > { %v244_v43 = vmul.f32 1.5258789e-05, %v243_v42 }
  0xd4   : > { %v245_v44 = vsel %vm156_vm1, %v244_v43, 0.0  ;;  %v253_v45 = vadd.f32 0.0001, %v244_v43 }
  0xd5   : > { %v246_v46 = vrot.slane %v245_v44, 4 }
  0xd6   : > { %411 = vrcp.f32 %v253_v45 }
  0xd7   : > { %v247_v47 = vadd.f32 %v246_v46, %v245_v44 }
  0xd9   : > { %v248_v48 = vrot.slane %v247_v47, 2 }
  0xdb   : > { %v249_v49 = vadd.f32 %v248_v48, %v247_v47 }
  0xdd   : > { %v250_v50 = vrot.slane %v249_v49, 1 }
  0xdf   : > { %v251_v52 = vadd.f32 %v250_v50, %v249_v49 }
  0xe0   : > { %v195_v53 = vpop.xlane.xlu0 %194  ;;  %v412_v56 = vpop.eup %411 }
  0xe1   : > { %v252_v54 = vadd.f32 0.0004, %v251_v52  ;;  %v196_v55 = vadd.f32 %v195_v53, %v192_v51 }
  0xe3   : > { %198 = vst.msk [vmem:[#allocation2] sm:$0x1] %vm154_vm0, %v196_v55  ;;  %v255_v58 = vmul.f32 %v412_v56, %v252_v54 }
  0xe5   : > { %413 = vlog2.f32 %v255_v58 }
  0xe7   : > { %v212_v59 = vpop.xlane.xlu1 %211 }
  0xe8   : > { %v213_v60 = vadd.f32 %v212_v59, %v199_v57 }
  0xea   : > { %v347_v61 = vld [vmem:[#allocation2] ss:$0 sm:$0xff]  ;;  %215 = vst.msk [vmem:[#allocation3] sm:$0xf] %vm156_vm1, %v213_v60 }
  0xeb   : > { %415 = vrcp.f32 %v347_v61 }
  0xef   : > { %v414_v62 = vpop.eup %413 }
  0xf0   : > { %v257_v2 = vmul.f32 0.6931472, %v414_v62 }
  0xf1   : > { %v234_v63 = vld [vmem:[#allocation3] sm:$0xf] }
  0xf5   : > { %v416_v0 = vpop.eup %415 }
  0xf6   : > { %v242_v1 = vmul.f32 %v416_v0, %v234_v63 }
  0xf8   : > { %v258_v3 = vmul.f32 %v257_v2, %v242_v1 }
  0xfa   : > { %259 = vst.msk [vmem:[%s149_s24] sm:$0xf] %vm156_vm1, %v258_v3 }
  0xfb PF: > { %s14_s11 = sadd.s32 1, %s497_s11   ;;  %s657_s6 = smov %s481_s7 }
  0xfc   : > { %p11_p9 = scmp.ge.s32.totalorder %s14_s11, 4   ;;  %s658_s7 = smov %s485_s8 }
  0xfd   : > { %s659_s8 = smov %s560_s18  ;;  %s660_s9 = smov %s493_s10 }
  0xfe   : > { %s661_s10 = smov %s663_s13  ;;  %13 = sbr.rel (!%p11_p9) target bundleno = 4 (0x4), region = 72 }
 0x105   :  { %279 = vsyncpa [#allocation6], 1 }
 0x106   :  { %281 = vsyncpa [#allocation6 + $0x1], 1 }

</bundles_post_ra>
